<compile_context>
chip_gen: v5e
topology: v5e:2x2
jax: 0.10.0
libtpu: 0.0.40
codegen_flags: <defaults>
</compile_context>

<pallas_src>
import numpy as np

import jax
import jax.numpy as jnp
from jax.experimental import pallas as pl
from jax.experimental.pallas import tpu as pltpu

_SLOPE = 0.1


def _fused_convs_kernel(x_ref, g_ref, p_ref, o_ref):
    """conv1+lrelu -> conv2+lrelu -> conv3, fully fused, one batch element.

    x_ref : (3, H*W)  f32   this batch element's image, spatial flattened
    g_ref : (H*W, P)  bf16  0/1 selection matrix: column o picks the single x
                            pixel read by output position o through the whole
                            stride/pad chain (all-zero column where conv1 reads
                            zero padding / the position is outside the chain)
    p_ref : (8, L)    f32   packed params + masks:
                              [0:3,0]=w1  [3,0]=b1  [0:5,1]=w2  [0:5,2]=b2
                              [0:3,3:8]=w3  [0:3,8]=b3
                              [6,0:P]=m2 (conv2 zero-pad mask)
                              [7,0:P]=m3 (conv3 zero-pad mask)
    o_ref : (3, P)    f32   v9 for this batch element, spatial flattened
    """
    P = o_ref.shape[1]

    b1 = p_ref[3:4, 0:1]          # (1,1)
    w2 = p_ref[0:5, 1:2]          # (5,1)
    b2 = p_ref[0:5, 2:3]          # (5,1)
    w3 = p_ref[0:3, 3:8]          # (3,5)
    b3 = p_ref[0:3, 8:9]          # (3,1)
    m2 = p_ref[6:7, 0:P]          # (1,P)
    m3 = p_ref[7:8, 0:P]          # (1,P)

    # ---- conv1 (1x1, 3->1): channel combine on the VPU, then the static
    #      stride/pad gather as a matmul against the 0/1 selection matrix. ----
    x = x_ref[...]                                   # (3, H*W) f32
    y = (p_ref[0:1, 0:1] * x[0:1, :]
         + p_ref[1:2, 0:1] * x[1:2, :]
         + p_ref[2:3, 0:1] * x[2:3, :])              # (1, H*W) = w1 . x
    # Split y into three bf16 chunks: bf16 products with a 0/1 RHS plus f32
    # accumulation are exact, independent of the MXU's f32 emulation mode.
    g = g_ref[...]                                   # (H*W, P) bf16
    y_hi = y.astype(jnp.bfloat16)
    r = y - y_hi.astype(jnp.float32)
    y_mid = r.astype(jnp.bfloat16)
    y_lo = (r - y_mid.astype(jnp.float32)).astype(jnp.bfloat16)
    xg = (jnp.dot(y_hi, g, preferred_element_type=jnp.float32)
          + jnp.dot(y_mid, g, preferred_element_type=jnp.float32)
          + jnp.dot(y_lo, g, preferred_element_type=jnp.float32))  # (1, P)

    v4 = xg + b1
    v4 = jnp.where(v4 > 0, v4, v4 * _SLOPE)          # leaky_relu
    v4 = v4 * m2                                     # conv2's zero padding

    # ---- conv2 (1x1, 1->5) + lrelu, batched onto sublanes: one (5,P) value --
    h = w2 * v4 + b2                                 # (5,1)*(1,P)+(5,1)
    h = jnp.where(h > 0, h, h * _SLOPE)
    h = h * m3                                       # conv3's zero padding

    # ---- conv3 (1x1, 5->3) on the VPU: single (3,P) accumulator built from
    #      (3,1) weight columns; one full-tile store, no concatenate. ---------
    acc = b3 + w3[:, 0:1] * h[0:1, :]
    for k in range(1, 5):
        acc = acc + w3[:, k:k + 1] * h[k:k + 1, :]
    o_ref[...] = acc


def _axis_chain(n_in):
    """Static per-axis index/mask chain through the three k=1 convs."""
    n1 = (n_in + 2 - 1) // 2 + 1      # conv1: stride 2, pad 1
    n2 = (n1 + 2 - 1) // 1 + 1        # conv2: stride 1, pad 1
    n3 = (n2 + 2 - 1) // 2 + 1        # conv3: stride 2, pad 1
    o = np.arange(n3)
    r = 2 * o - 1                     # v8 index read by conv3
    m3 = (r >= 0) & (r < n2)
    p = r - 1                         # v4 index read by conv2
    m2 = m3 & (p >= 0) & (p < n1)
    q = 2 * p - 1                     # x index read by conv1
    m1 = m2 & (q >= 0) & (q < n_in)
    return n3, q, m1, m2, m3


def model_forward(x, params):
    w1, b1, w2, b2, w3, b3 = params
    N, C, H, W = x.shape
    HW = H * W

    H3, qh, m1h, m2h, m3h = _axis_chain(H)
    W3, qw, m1w, m2w, m3w = _axis_chain(W)
    P = H3 * W3
    L = max(P, 9)                     # lane width of the packed param tile

    # ---- compile-time constants (baked literals; zero runtime HLO work) -----
    m1 = np.outer(m1h, m1w).reshape(P)
    m2 = np.outer(m2h, m2w).reshape(P).astype(np.float32)
    m3 = np.outer(m3h, m3w).reshape(P).astype(np.float32)
    flat_q = (qh[:, None] * W + qw[None, :]).reshape(P)
    gsel_np = np.zeros((HW, P), np.float32)
    cols = np.arange(P)
    gsel_np[flat_q[m1], cols[m1]] = 1.0
    gsel = jnp.asarray(gsel_np, dtype=jnp.bfloat16)   # 0/1 is exact in bf16

    # ---- one tiny (8, L) tile with every weight/bias + the two pad masks ----
    base = np.zeros((8, L), np.float32)
    base[6, :P] = m2
    base[7, :P] = m3
    pt = jnp.asarray(base)
    pt = pt.at[0:3, 0].set(w1.reshape(3))
    pt = pt.at[3, 0].set(b1[0])
    pt = pt.at[0:5, 1].set(w2.reshape(5))
    pt = pt.at[0:5, 2].set(b2)
    pt = pt.at[0:3, 3:8].set(w3.reshape(3, 5))
    pt = pt.at[0:3, 8].set(b3)

    x2 = x.reshape(N, C, HW)          # free reshape (contiguous)

    out = pl.pallas_call(
        _fused_convs_kernel,
        out_shape=jax.ShapeDtypeStruct((N, 3, P), jnp.float32),
        grid=(N,),
        in_specs=[
            pl.BlockSpec((None, C, HW), lambda n: (n, 0, 0)),   # per-batch x
            pl.BlockSpec((HW, P), lambda n: (0, 0)),            # gather matrix
            pl.BlockSpec((8, L), lambda n: (0, 0)),             # params+masks
        ],
        out_specs=pl.BlockSpec((None, 3, P), lambda n: (n, 0, 0)),
        compiler_params=pltpu.CompilerParams(
            dimension_semantics=("parallel",)),
    )(x2, gsel, pt)

    v9 = out.reshape(N, 3, H3, W3)    # free reshape (contiguous)
    # TODO(synk): torch.where(v9 > 0, v9, v5 * -0.1) in the source module is
    # broadcast-incompatible ([N,3,7,7] vs [N,5,11,11]) and raises in PyTorch,
    # so it is omitted and v9 (the conv3 output) is returned.
    return v9


def reference_forward(x, params):
    """Pure-JAX reference (lax.conv) for the same three conv + lrelu layers."""
    w1, b1, w2, b2, w3, b3 = params

    def conv1x1(t, w, b, stride, pad):
        y = jax.lax.conv_general_dilated(
            t, w, window_strides=(stride, stride),
            padding=((pad, pad), (pad, pad)),
            dimension_numbers=("NCHW", "OIHW", "NCHW"),
            precision=jax.lax.Precision.HIGHEST)
        return y + b.reshape(1, -1, 1, 1)

    lrelu = lambda t: jnp.where(t > 0, t, t * _SLOPE)
    v4 = lrelu(conv1x1(x, w1, b1, 2, 1))
    v8 = lrelu(conv1x1(v4, w2, b2, 1, 1))
    return conv1x1(v8, w3, b3, 2, 1)


def init_params(key):
    """PyTorch Conv2d default init: U(-1/sqrt(fan_in), 1/sqrt(fan_in))."""
    def conv_init(k, cout, cin):
        k1, k2 = jax.random.split(k)
        bound = 1.0 / (cin ** 0.5)   # fan_in = cin * 1 * 1
        w = jax.random.uniform(k1, (cout, cin, 1, 1), jnp.float32, -bound, bound)
        b = jax.random.uniform(k2, (cout,), jnp.float32, -bound, bound)
        return w, b

    k1, k2, k3 = jax.random.split(key, 3)
    w1, b1 = conv_init(k1, 1, 3)   # conv1: 3 -> 1
    w2, b2 = conv_init(k2, 5, 1)   # conv2: 1 -> 5
    w3, b3 = conv_init(k3, 3, 5)   # conv3: 5 -> 3
    return (w1, b1, w2, b2, w3, b3)


if __name__ == "__main__":
    key = jax.random.PRNGKey(0)
    k_params, k_x = jax.random.split(key)
    params = init_params(k_params)
    x = jax.random.normal(k_x, (2, 3, 16, 16), dtype=jnp.float32)

    out = jax.jit(model_forward)(x, params)
    out = jax.block_until_ready(out)
    assert out.shape == (2, 3, 7, 7), out.shape

    ref = reference_forward(x, params)
    np.testing.assert_allclose(np.asarray(out), np.asarray(ref),
                               rtol=1e-4, atol=1e-5)

    print("KERNEL_OK")
</pallas_src>

<mosaic_0001>
module attributes {stable_mosaic.version = 11 : i64} {
  func.func @_fused_convs_kernel(%arg0: i32, %arg1: memref<1x3x256xf32, #tpu.memory_space<vmem>>, %arg2: memref<256x49xbf16, #tpu.memory_space<vmem>>, %arg3: memref<8x49xf32, #tpu.memory_space<vmem>>, %arg4: memref<1x3x49xf32, #tpu.memory_space<vmem>>) attributes {dimension_semantics = [#tpu.dimension_semantics<parallel>], iteration_bounds = array<i64: 2>, scalar_prefetch = 0 : i64, scratch_operands = 0 : i64, tpu.core_type = #tpu.core_type<tc>, window_params = [{transform_indices = @transform_0, window_bounds = array<i64: 1, 3, 256>}, {pipeline_mode = #tpu.pipeline_mode<synchronous>, transform_indices = @transform_1, window_bounds = array<i64: 256, 49>}, {pipeline_mode = #tpu.pipeline_mode<synchronous>, transform_indices = @transform_2, window_bounds = array<i64: 8, 49>}, {transform_indices = @transform_3, window_bounds = array<i64: 1, 3, 49>}]} {
    %c3 = arith.constant 3 : index
    %c0 = arith.constant 0 : index
    %0 = vector.load %arg3[%c3, %c0] : memref<8x49xf32, #tpu.memory_space<vmem>>, vector<1x1xf32>
    %c0_0 = arith.constant 0 : index
    %c1 = arith.constant 1 : index
    %1 = vector.load %arg3[%c0_0, %c1] : memref<8x49xf32, #tpu.memory_space<vmem>>, vector<5x1xf32>
    %c0_1 = arith.constant 0 : index
    %c2 = arith.constant 2 : index
    %2 = vector.load %arg3[%c0_1, %c2] : memref<8x49xf32, #tpu.memory_space<vmem>>, vector<5x1xf32>
    %c0_2 = arith.constant 0 : index
    %c3_3 = arith.constant 3 : index
    %3 = vector.load %arg3[%c0_2, %c3_3] : memref<8x49xf32, #tpu.memory_space<vmem>>, vector<3x5xf32>
    %c0_4 = arith.constant 0 : index
    %c8 = arith.constant 8 : index
    %4 = vector.load %arg3[%c0_4, %c8] : memref<8x49xf32, #tpu.memory_space<vmem>>, vector<3x1xf32>
    %c6 = arith.constant 6 : index
    %c0_5 = arith.constant 0 : index
    %5 = vector.load %arg3[%c6, %c0_5] : memref<8x49xf32, #tpu.memory_space<vmem>>, vector<1x49xf32>
    %c7 = arith.constant 7 : index
    %c0_6 = arith.constant 0 : index
    %6 = vector.load %arg3[%c7, %c0_6] : memref<8x49xf32, #tpu.memory_space<vmem>>, vector<1x49xf32>
    %c0_7 = arith.constant 0 : index
    %c0_8 = arith.constant 0 : index
    %c0_9 = arith.constant 0 : index
    %7 = vector.load %arg1[%c0_7, %c0_8, %c0_9] : memref<1x3x256xf32, #tpu.memory_space<vmem>>, vector<1x3x256xf32>
    %8 = vector.shape_cast %7 : vector<1x3x256xf32> to vector<3x256xf32>
    %c0_10 = arith.constant 0 : index
    %c0_11 = arith.constant 0 : index
    %9 = vector.load %arg3[%c0_10, %c0_11] : memref<8x49xf32, #tpu.memory_space<vmem>>, vector<1x1xf32>
    %10 = vector.extract_strided_slice %8 {offsets = [0, 0], sizes = [1, 256], strides = [1, 1]} : vector<3x256xf32> to vector<1x256xf32>
    %11 = vector.broadcast %9 : vector<1x1xf32> to vector<1x256xf32>
    %12 = arith.mulf %11, %10 : vector<1x256xf32>
    %c1_12 = arith.constant 1 : index
    %c0_13 = arith.constant 0 : index
    %13 = vector.load %arg3[%c1_12, %c0_13] : memref<8x49xf32, #tpu.memory_space<vmem>>, vector<1x1xf32>
    %14 = vector.extract_strided_slice %8 {offsets = [1, 0], sizes = [1, 256], strides = [1, 1]} : vector<3x256xf32> to vector<1x256xf32>
    %15 = vector.broadcast %13 : vector<1x1xf32> to vector<1x256xf32>
    %16 = arith.mulf %15, %14 : vector<1x256xf32>
    %17 = arith.addf %12, %16 : vector<1x256xf32>
    %c2_14 = arith.constant 2 : index
    %c0_15 = arith.constant 0 : index
    %18 = vector.load %arg3[%c2_14, %c0_15] : memref<8x49xf32, #tpu.memory_space<vmem>>, vector<1x1xf32>
    %19 = vector.extract_strided_slice %8 {offsets = [2, 0], sizes = [1, 256], strides = [1, 1]} : vector<3x256xf32> to vector<1x256xf32>
    %20 = vector.broadcast %18 : vector<1x1xf32> to vector<1x256xf32>
    %21 = arith.mulf %20, %19 : vector<1x256xf32>
    %22 = arith.addf %17, %21 : vector<1x256xf32>
    %c0_16 = arith.constant 0 : index
    %c0_17 = arith.constant 0 : index
    %23 = vector.load %arg2[%c0_16, %c0_17] : memref<256x49xbf16, #tpu.memory_space<vmem>>, vector<256x49xbf16>
    %24 = arith.truncf %22 : vector<1x256xf32> to vector<1x256xbf16>
    %25 = arith.extf %24 : vector<1x256xbf16> to vector<1x256xf32>
    %26 = arith.subf %22, %25 : vector<1x256xf32>
    %27 = arith.truncf %26 : vector<1x256xf32> to vector<1x256xbf16>
    %28 = arith.extf %27 : vector<1x256xbf16> to vector<1x256xf32>
    %29 = arith.subf %26, %28 : vector<1x256xf32>
    %30 = arith.truncf %29 : vector<1x256xf32> to vector<1x256xbf16>
    %cst = arith.constant dense<0.000000e+00> : vector<1x49xf32>
    %31 = tpu.matmul %24, %23, %cst {dimension_numbers = #tpu.dot_dimension_numbers<[1], [0], [0], [1], [0, 0, 1, 1], [], []>} : vector<1x256xbf16>, vector<256x49xbf16>, vector<1x49xf32> -> vector<1x49xf32>
    %cst_18 = arith.constant dense<0.000000e+00> : vector<1x49xf32>
    %32 = tpu.matmul %27, %23, %cst_18 {dimension_numbers = #tpu.dot_dimension_numbers<[1], [0], [0], [1], [0, 0, 1, 1], [], []>} : vector<1x256xbf16>, vector<256x49xbf16>, vector<1x49xf32> -> vector<1x49xf32>
    %33 = arith.addf %31, %32 : vector<1x49xf32>
    %cst_19 = arith.constant dense<0.000000e+00> : vector<1x49xf32>
    %34 = tpu.matmul %30, %23, %cst_19 {dimension_numbers = #tpu.dot_dimension_numbers<[1], [0], [0], [1], [0, 0, 1, 1], [], []>} : vector<1x256xbf16>, vector<256x49xbf16>, vector<1x49xf32> -> vector<1x49xf32>
    %35 = arith.addf %33, %34 : vector<1x49xf32>
    %36 = vector.broadcast %0 : vector<1x1xf32> to vector<1x49xf32>
    %37 = arith.addf %35, %36 : vector<1x49xf32>
    %cst_20 = arith.constant 0.000000e+00 : f32
    %38 = vector.broadcast %cst_20 : f32 to vector<1x49xf32>
    %39 = arith.cmpf ogt, %37, %38 : vector<1x49xf32>
    %cst_21 = arith.constant 1.000000e-01 : f32
    %40 = vector.broadcast %cst_21 : f32 to vector<1x49xf32>
    %41 = arith.mulf %37, %40 : vector<1x49xf32>
    %42 = arith.select %39, %37, %41 : vector<1x49xi1>, vector<1x49xf32>
    %43 = arith.mulf %42, %5 : vector<1x49xf32>
    %44 = vector.broadcast %1 : vector<5x1xf32> to vector<5x49xf32>
    %45 = vector.broadcast %43 : vector<1x49xf32> to vector<5x49xf32>
    %46 = arith.mulf %44, %45 : vector<5x49xf32>
    %47 = vector.broadcast %2 : vector<5x1xf32> to vector<5x49xf32>
    %48 = arith.addf %46, %47 : vector<5x49xf32>
    %cst_22 = arith.constant 0.000000e+00 : f32
    %49 = vector.broadcast %cst_22 : f32 to vector<5x49xf32>
    %50 = arith.cmpf ogt, %48, %49 : vector<5x49xf32>
    %cst_23 = arith.constant 1.000000e-01 : f32
    %51 = vector.broadcast %cst_23 : f32 to vector<5x49xf32>
    %52 = arith.mulf %48, %51 : vector<5x49xf32>
    %53 = arith.select %50, %48, %52 : vector<5x49xi1>, vector<5x49xf32>
    %54 = vector.broadcast %6 : vector<1x49xf32> to vector<5x49xf32>
    %55 = arith.mulf %53, %54 : vector<5x49xf32>
    %56 = vector.extract_strided_slice %3 {offsets = [0, 0], sizes = [3, 1], strides = [1, 1]} : vector<3x5xf32> to vector<3x1xf32>
    %57 = vector.extract_strided_slice %55 {offsets = [0, 0], sizes = [1, 49], strides = [1, 1]} : vector<5x49xf32> to vector<1x49xf32>
    %58 = vector.broadcast %56 : vector<3x1xf32> to vector<3x49xf32>
    %59 = vector.broadcast %57 : vector<1x49xf32> to vector<3x49xf32>
    %60 = arith.mulf %58, %59 : vector<3x49xf32>
    %61 = vector.broadcast %4 : vector<3x1xf32> to vector<3x49xf32>
    %62 = arith.addf %61, %60 : vector<3x49xf32>
    %63 = vector.extract_strided_slice %3 {offsets = [0, 1], sizes = [3, 1], strides = [1, 1]} : vector<3x5xf32> to vector<3x1xf32>
    %64 = vector.extract_strided_slice %55 {offsets = [1, 0], sizes = [1, 49], strides = [1, 1]} : vector<5x49xf32> to vector<1x49xf32>
    %65 = vector.broadcast %63 : vector<3x1xf32> to vector<3x49xf32>
    %66 = vector.broadcast %64 : vector<1x49xf32> to vector<3x49xf32>
    %67 = arith.mulf %65, %66 : vector<3x49xf32>
    %68 = arith.addf %62, %67 : vector<3x49xf32>
    %69 = vector.extract_strided_slice %3 {offsets = [0, 2], sizes = [3, 1], strides = [1, 1]} : vector<3x5xf32> to vector<3x1xf32>
    %70 = vector.extract_strided_slice %55 {offsets = [2, 0], sizes = [1, 49], strides = [1, 1]} : vector<5x49xf32> to vector<1x49xf32>
    %71 = vector.broadcast %69 : vector<3x1xf32> to vector<3x49xf32>
    %72 = vector.broadcast %70 : vector<1x49xf32> to vector<3x49xf32>
    %73 = arith.mulf %71, %72 : vector<3x49xf32>
    %74 = arith.addf %68, %73 : vector<3x49xf32>
    %75 = vector.extract_strided_slice %3 {offsets = [0, 3], sizes = [3, 1], strides = [1, 1]} : vector<3x5xf32> to vector<3x1xf32>
    %76 = vector.extract_strided_slice %55 {offsets = [3, 0], sizes = [1, 49], strides = [1, 1]} : vector<5x49xf32> to vector<1x49xf32>
    %77 = vector.broadcast %75 : vector<3x1xf32> to vector<3x49xf32>
    %78 = vector.broadcast %76 : vector<1x49xf32> to vector<3x49xf32>
    %79 = arith.mulf %77, %78 : vector<3x49xf32>
    %80 = arith.addf %74, %79 : vector<3x49xf32>
    %81 = vector.extract_strided_slice %3 {offsets = [0, 4], sizes = [3, 1], strides = [1, 1]} : vector<3x5xf32> to vector<3x1xf32>
    %82 = vector.extract_strided_slice %55 {offsets = [4, 0], sizes = [1, 49], strides = [1, 1]} : vector<5x49xf32> to vector<1x49xf32>
    %83 = vector.broadcast %81 : vector<3x1xf32> to vector<3x49xf32>
    %84 = vector.broadcast %82 : vector<1x49xf32> to vector<3x49xf32>
    %85 = arith.mulf %83, %84 : vector<3x49xf32>
    %86 = arith.addf %80, %85 : vector<3x49xf32>
    %c0_24 = arith.constant 0 : index
    %c0_25 = arith.constant 0 : index
    %c0_26 = arith.constant 0 : index
    %87 = vector.load %arg4[%c0_24, %c0_25, %c0_26] : memref<1x3x49xf32, #tpu.memory_space<vmem>>, vector<1x3x49xf32>
    %88 = vector.shape_cast %87 : vector<1x3x49xf32> to vector<3x49xf32>
    %89 = vector.shape_cast %86 : vector<3x49xf32> to vector<1x3x49xf32>
    tpu.vector_store %arg4[%c0_24, %c0_25, %c0_26], %89 {strides = array<i32>} : memref<1x3x49xf32, #tpu.memory_space<vmem>>, vector<1x3x49xf32>,
    return
  }
  func.func @transform_0(%arg0: i32) -> (i32, i32, i32) {
    %c0_i32 = arith.constant 0 : i32
    %c0_i32_0 = arith.constant 0 : i32
    %c0_i32_1 = arith.constant 0 : i32
    return %arg0, %c0_i32, %c0_i32_0 : i32, i32, i32
  }
  func.func @transform_1(%arg0: i32) -> (i32, i32) {
    %c0_i32 = arith.constant 0 : i32
    %c0_i32_0 = arith.constant 0 : i32
    %c0_i32_1 = arith.constant 0 : i32
    return %c0_i32, %c0_i32_0 : i32, i32
  }
  func.func @transform_2(%arg0: i32) -> (i32, i32) {
    %c0_i32 = arith.constant 0 : i32
    %c0_i32_0 = arith.constant 0 : i32
    %c0_i32_1 = arith.constant 0 : i32
    return %c0_i32, %c0_i32_0 : i32, i32
  }
  func.func @transform_3(%arg0: i32) -> (i32, i32, i32) {
    %c0_i32 = arith.constant 0 : i32
    %c0_i32_0 = arith.constant 0 : i32
    %c0_i32_1 = arith.constant 0 : i32
    return %arg0, %c0_i32, %c0_i32_0 : i32, i32, i32
  }
}

</mosaic_0001>

<bundles_post_ra>
// kernel: model_forward.1
= control target key start
LH: loop header
LB: loop body
LE: loop exit
PB: predicated region body
PF: predicated region fallthrough
CT: control target
= control target key end

     0   :  { %s727_s12 = smov 0   ;;  %s824_s0 = inlined_call_operand.vmem [shape: f32[2,3,256], index: 0, kind: input, shape index: {}]   ;;  %s825_s1 = inlined_call_operand.vmem [shape: bf16[256,49], index: 1, kind: input, shape index: {}]   ;;  %s826_s2 = inlined_call_operand.vmem [shape: f32[8,49], index: 2, kind: input, shape index: {}]   ;;  %s827_s3 = inlined_call_operand.vmem [shape: f32[2,3,49], index: 3, kind: output, shape index: {}]  }
   0x1 LB: > { %s571_s13 = sadd.s32 4294967295, %s696_s12   ;;  %p575_p0 = scmp.ge.s32.totalorder %s696_s12, 1  ;;  %s696_s12 = sphi %s727_s12, %s13_s12  }
   0x2   : > { %p137_p1 = scmp.lt.s32.totalorder %s696_s12, 3 }
   0x4   : > { %p138_p2 = pnand %p575_p0, %p137_p1 }
   0x5   : > { %p160_p3 = scmp.lt.s32.totalorder (!%p138_p2), %s571_s13, 1 }
   0x6   : > { %141 = sbr.rel (%p138_p2) target bundleno = 333 (0x14d), region = 32 }
   0xb   : > { %v175_v0 = vld [vmem:[%s826_s2] sm:$0x1]  ;;  %v202_v1 = vld [vmem:[%s826_s2 + $0x2] sm:$0x1]  ;;  %v653_v2 = vld [vmem:[%s825_s1 + $0x38] sm:$0xff]  ;;  %v698_v3 = vmov 0  }
   0xc   : > { %679 = vset.pattern.permute.xlu0 %v698_v3  ;;  %680 = vset.pattern.permute.xlu1 %v698_v3  ;;  %v661_v4 = vld [vmem:[%s825_s1 + $0x78] sm:$0xff]  ;;  %v652_v5 = vld [vmem:[%s825_s1 + $0x30] sm:$0xff]  ;;  %v188_v7 = vld [vmem:[%s826_s2 + $0x1] sm:$0x1]  ;;  %s829_s13 = smov (!%p160_p3, %s571_s13), 1  ;;  %v699_v40 = vmov 3  }
   0xd   : > { %178 = vperm.xlu0 %679, %v175_v0   ;;  %205 = vperm.xlu1 %680, %v202_v1   ;;  %v660_v6 = vld [vmem:[%s825_s1 + $0x70] sm:$0xff]  ;;  %v169_v8 = vld [vmem:[%s826_s2 + $0x3] sm:$0x1]  ;;  %v651_v9 = vld [vmem:[%s825_s1 + $0x28] sm:$0xff]  ;;  %s645_s29 = sshll.u32 %s829_s13, 3  ;;  %v700_v41 = vmov 8  }
   0xe   : > { %363 = vmatpush.bf16.msra.mxu0 %v653_v2  ;;  %376 = vmatpush.bf16.msra.mxu1 %v661_v4  ;;  %v659_v10 = vld [vmem:[%s825_s1 + $0x68] sm:$0xff]  ;;  %v650_v11 = vld [vmem:[%s825_s1 + $0x20] sm:$0xff]  ;;  %v649_v13 = vld [vmem:[%s825_s1 + $0x18] sm:$0xff]  ;;  %s164_s5 = scalar_lea.vmem %s824_s0, %s645_s29  ;;  %v701_v45 = vmov 1   ;;  %v702_v56 = vmov 7   ;;  %v703_v57 = vmov 5  }
   0xf   : > { %396 = vmatpush.bf16.msra.mxu2 %v653_v2  ;;  %409 = vmatpush.bf16.msra.mxu3 %v661_v4  ;;  %v658_v12 = vld [vmem:[%s825_s1 + $0x60] sm:$0xff]  ;;  %v657_v14 = vld [vmem:[%s825_s1 + $0x58] sm:$0xff]  ;;  %v648_v15 = vld [vmem:[%s825_s1 + $0x10] sm:$0xff]  ;;  %v704_v60 = vmov 2   ;;  %v705_v1 = vmov 4   ;;  %s578_s16 = sshll.u32 %s829_s13, 2 }
  0x10   : > { %v656_v16 = vld [vmem:[%s825_s1 + $0x50] sm:$0xff]  ;;  %v647_v17 = vld [vmem:[%s825_s1 + $0x8] sm:$0xff]  ;;  %v646_v19 = vld [vmem:[%s825_s1] sm:$0xff]  ;;  %681 = vset.pattern.permute.xlu2 %v701_v45  ;;  %vm516_vm2 = vcmask 395264   ;;  %s168_s19 = scalar_lea.vmem %s827_s3, %s578_s16 }
  0x11   : > { %v655_v18 = vld [vmem:[%s825_s1 + $0x48] sm:$0xff]  ;;  %v654_v20 = vld [vmem:[%s825_s1 + $0x40] sm:$0xff] }
  0x12   : > { %364 = vmatpush.bf16.msra.mxu0 %v652_v5  ;;  %377 = vmatpush.bf16.msra.mxu1 %v660_v6  ;;  %v174_v22 = vld [vmem:[%s164_s5] sm:$0x77] }
  0x13   : > { %397 = vmatpush.bf16.msra.mxu2 %v652_v5  ;;  %410 = vmatpush.bf16.msra.mxu3 %v660_v6  ;;  %v182_v23 = vperm.slane %v174_v22, 0  ;;  %v183_v24 = vperm.slane %v174_v22, 4  ;;  %v208_v25 = vperm.slane %v174_v22, 2  ;;  %v209_v26 = vperm.slane %v174_v22, 6  ;;  %v171_v39 = vld [vmem:[%s826_s2] sm:$0x7] }
  0x14   : > { %v194_v27 = vperm.slane %v174_v22, 1  ;;  %v195_v28 = vperm.slane %v174_v22, 5  ;;  %v170_v42 = vld [vmem:[%s826_s2] sm:$0x1f] }
  0x15   : > { %191 = vperm.xlu0 %679, %v188_v7   ;;  %451 = vperm.xlu1 %680, %v169_v8  }
  0x16   : > { %365 = vmatpush.bf16.msra.mxu0 %v651_v9  ;;  %378 = vmatpush.bf16.msra.mxu1 %v659_v10 }
  0x17   : > { %398 = vmatpush.bf16.msra.mxu2 %v651_v9  ;;  %411 = vmatpush.bf16.msra.mxu3 %v659_v10 }
  0x18   : > { %461 = vperm.xlu2 %681, %v170_v42  }
  0x1a   : > { %366 = vmatpush.bf16.msra.mxu0 %v650_v11  ;;  %379 = vmatpush.bf16.msra.mxu1 %v658_v12 }
  0x1b   : > { %399 = vmatpush.bf16.msra.mxu2 %v650_v11  ;;  %412 = vmatpush.bf16.msra.mxu3 %v658_v12 }
  0x1d   : > { %683 = vset.pattern.permute.xlu0 %v699_v40  ;;  %684 = vset.pattern.permute.xlu1 %v700_v41 }
  0x1e   : > { %367 = vmatpush.bf16.msra.mxu0 %v649_v13  ;;  %380 = vmatpush.bf16.msra.mxu1 %v657_v14 }
  0x1f   : > { %400 = vmatpush.bf16.msra.mxu2 %v649_v13  ;;  %413 = vmatpush.bf16.msra.mxu3 %v657_v14 }
  0x20   : > { %478 = vperm.xlu0 %683, %v171_v39   ;;  %484 = vperm.xlu1 %684, %v171_v39  }
  0x21   : > { %682 = vset.pattern.permute.xlu2 %v704_v60 }
  0x22   : > { %368 = vmatpush.bf16.msra.mxu0 %v648_v15  ;;  %381 = vmatpush.bf16.msra.mxu1 %v656_v16 }
  0x23   : > { %401 = vmatpush.bf16.msra.mxu2 %v648_v15  ;;  %414 = vmatpush.bf16.msra.mxu3 %v656_v16 }
  0x24   : > { %467 = vperm.xlu2 %682, %v170_v42  }
  0x26   : > { %369 = vmatpush.bf16.msra.mxu0 %v647_v17  ;;  %382 = vmatpush.bf16.msra.mxu1 %v655_v18 }
  0x27   : > { %402 = vmatpush.bf16.msra.mxu2 %v647_v17  ;;  %415 = vmatpush.bf16.msra.mxu3 %v655_v18 }
  0x28   : > { %688 = vset.pattern.permute.xlu0 %v702_v56  ;;  %686 = vset.pattern.permute.xlu1 %v703_v57 }
  0x29   : > { %510 = vperm.xlu0 %688, %v171_v39   ;;  %496 = vperm.xlu1 %686, %v171_v39  }
  0x2a   : > { %370 = vmatpush.bf16.msra.mxu0 %v646_v19  ;;  %383 = vmatpush.bf16.msra.mxu1 %v654_v20 }
  0x2b   : > { %403 = vmatpush.bf16.msra.mxu2 %v646_v19  ;;  %416 = vmatpush.bf16.msra.mxu3 %v654_v20 }
  0x2c   : > { %685 = vset.pattern.permute.xlu2 %v705_v1 }
  0x2d   : > { %489 = vperm.xlu2 %685, %v171_v39  }
  0x2e   : > { %422 = vmatpush.bf16.msrb.mxu0 %v653_v2  ;;  %435 = vmatpush.bf16.msrb.mxu1 %v661_v4 }
  0x32   : > { %423 = vmatpush.bf16.msrb.mxu0 %v652_v5  ;;  %436 = vmatpush.bf16.msrb.mxu1 %v660_v6  ;;  %v706_v6 = vmov 6  }
  0x35   : > { %687 = vset.pattern.permute.xlu2 %v706_v6 }
  0x36   : > { %424 = vmatpush.bf16.msrb.mxu0 %v651_v9  ;;  %437 = vmatpush.bf16.msrb.mxu1 %v659_v10 }
  0x37   : > { %503 = vperm.xlu2 %687, %v171_v39  }
  0x3a   : > { %425 = vmatpush.bf16.msrb.mxu0 %v650_v11  ;;  %438 = vmatpush.bf16.msrb.mxu1 %v658_v12 }
  0x3e   : > { %426 = vmatpush.bf16.msrb.mxu0 %v649_v13  ;;  %439 = vmatpush.bf16.msrb.mxu1 %v657_v14 }
  0x42   : > { %427 = vmatpush.bf16.msrb.mxu0 %v648_v15  ;;  %440 = vmatpush.bf16.msrb.mxu1 %v656_v16 }
  0x46   : > { %428 = vmatpush.bf16.msrb.mxu0 %v647_v17  ;;  %441 = vmatpush.bf16.msrb.mxu1 %v655_v18 }
  0x4a   : > { %429 = vmatpush.bf16.msrb.mxu0 %v646_v19  ;;  %442 = vmatpush.bf16.msrb.mxu1 %v654_v20 }
  0x72   : > { %v462_v17 = vpop.permute.xlu2 %461 }
  0x7f   : > { %v179_v21 = vpop.permute.xlu0 %178  ;;  %v206_v31 = vpop.permute.xlu1 %205 }
  0x80   : > { %v186_v29 = vmul.f32 %v182_v23, %v179_v21  ;;  %v187_v30 = vmul.f32 %v183_v24, %v179_v21  ;;  %v212_v33 = vmul.f32 %v208_v25, %v206_v31  ;;  %v213_v34 = vmul.f32 %v209_v26, %v206_v31  ;;  %v172_v26 = vld [vmem:[%s826_s2 + $0x6] sm:$0x1] }
  0x87   : > { %v192_v32 = vpop.permute.xlu0 %191  ;;  %v452_v23 = vpop.permute.xlu1 %451 }
  0x88   : > { %v198_v35 = vmul.f32 %v194_v27, %v192_v32  ;;  %v199_v36 = vmul.f32 %v195_v28, %v192_v32  ;;  %v468_v27 = vpop.permute.xlu2 %467 }
  0x8a   : > { %v200_v37 = vadd.f32 %v198_v35, %v186_v29  ;;  %v201_v38 = vadd.f32 %v199_v36, %v187_v30  ;;  %v689_v36 = vld [vmem:[%s826_s2 + $0x7] ss:$0 sm:$0xff] }
  0x8c   : > { %v214_v43 = vadd.f32 %v212_v33, %v200_v37  ;;  %v215_v44 = vadd.f32 %v213_v34, %v201_v38 }
  0x8e   : > { %v248_v46 = vpack.c.bf16 %v215_v44, %v214_v43 }
  0x90   : > { %v249_v47 = vunpack.c.l.bf16 %v248_v46  ;;  %v250_v48 = vunpack.c.h.bf16 %v248_v46  ;;  %v390_v49 = vunpack.c.l.b16 %v248_v46  ;;  %v391_v50 = vunpack.c.h.b16 %v248_v46  ;;  %v490_v38 = vpop.permute.xlu2 %489 }
  0x92   : > { %v251_v51 = vsub.f32 %v214_v43, %v249_v47  ;;  %v252_v52 = vsub.f32 %v215_v44, %v250_v48  ;;  %v392_v53 = vpack.c.b16 %v390_v49, %v390_v49  ;;  %v393_v54 = vpack.c.b16 %v391_v50, %v391_v50  ;;  %v485_v35 = vpop.permute.xlu1 %484  ;;  %v479_v40 = vpop.permute.xlu0 %478 }
  0x94   : > { %v253_v55 = vpack.c.bf16 %v252_v52, %v251_v51  ;;  %404 = vmatmul.bf16.vlgmr.msra.gmra.mxu2 %v392_v53  ;;  %417 = vmatmul.bf16.vlgmr.msra.gmra.mxu3 %v393_v54 }
  0x96   : > { %v261_v58 = vunpack.c.l.b16 %v253_v55  ;;  %v262_v59 = vunpack.c.h.b16 %v253_v55  ;;  %v254_v63 = vunpack.c.l.bf16 %v253_v55  ;;  %v255_v0 = vunpack.c.h.bf16 %v253_v55 }
  0x98   : > { %v263_v61 = vpack.c.b16 %v261_v58, %v261_v58  ;;  %v264_v62 = vpack.c.b16 %v262_v59, %v262_v59  ;;  %v256_v2 = vsub.f32 %v251_v51, %v254_v63  ;;  %v257_v3 = vsub.f32 %v252_v52, %v255_v0  ;;  %v504_v50 = vpop.permute.xlu2 %503 }
  0x9a   : > { %371 = vmatmul.bf16.vlgmr.msra.gmra.mxu0 %v263_v61  ;;  %384 = vmatmul.bf16.vlgmr.msra.gmra.mxu1 %v264_v62  ;;  %v258_v4 = vpack.c.bf16 %v256_v2, %v256_v2  ;;  %v259_v5 = vpack.c.bf16 %v257_v3, %v257_v3 }
  0x9b   : > { %v497_v46 = vpop.permute.xlu1 %496  ;;  %v511_v54 = vpop.permute.xlu0 %510 }
  0xaa   : > { %430 = vmatmul.bf16.vlgmr.msrb.gmra.mxu0 %v258_v4  ;;  %443 = vmatmul.bf16.vlgmr.msrb.gmra.mxu1 %v259_v5 }
 0x117   : > { %v372_v7 = vpop.f32.mrf.mxu0  ;;  %v385_v8 = vpop.f32.mrf.mxu1 }
 0x118   : > { %v405_v9 = vpop.f32.mrf.mxu2  ;;  %v418_v10 = vpop.f32.mrf.mxu3  ;;  %v386_v13 = vadd.f32 %v385_v8, %v372_v7 }
 0x11a   : > { %v406_v16 = vadd.f32 %v405_v9, %v386_v13 }
 0x11c   : > { %v419_v20 = vadd.f32 %v418_v10, %v406_v16 }
 0x11f   : > { %v374_v11 = vpop.f32.mrf.mxu0  ;;  %v387_v12 = vpop.f32.mrf.mxu1 }
 0x120   : > { %v407_v14 = vpop.f32.mrf.mxu2  ;;  %v420_v15 = vpop.f32.mrf.mxu3 }
 0x127   : > { %v431_v18 = vpop.f32.mrf.mxu0  ;;  %v444_v19 = vpop.f32.mrf.mxu1 }
 0x128   : > { %v445_v21 = vadd.f32 %v444_v19, %v431_v18 }
 0x12a   : > { %v448_v22 = vadd.f32 %v445_v21, %v419_v20 }
 0x12c   : > { %v454_v24 = vadd.f32 %v452_v23, %v448_v22 }
 0x12e   : > { %v456_v25 = vmul.f32 0.1, %v454_v24  ;;  %vm455_vm0 = vcmp.gt.f32.partialorder %v454_v24, 0.0 }
 0x12f   : > { %v433_v28 = vpop.f32.mrf.mxu0  ;;  %v446_v29 = vpop.f32.mrf.mxu1 }
 0x130   : > { %v457_v30 = vsel %vm455_vm0, %v454_v24, %v456_v25 }
 0x131   : > { %v458_v31 = vmul.f32 %v457_v30, %v172_v26 }
 0x133   : > { %v464_v32 = vperm.slane %v458_v31, 0 }
 0x135   : > { %v465_v33 = vmul.f32 %v464_v32, %v462_v17 }
 0x137   : > { %v470_v34 = vadd.f32 %v468_v27, %v465_v33 }
 0x139   : > { %vm471_vm1 = vcmp.gt.f32.partialorder %v470_v34, 0.0  ;;  %v472_v37 = vmul.f32 0.1, %v470_v34 }
 0x13b   : > { %v473_v39 = vsel %vm471_vm1, %v470_v34, %v472_v37 }
 0x13c   : > { %v475_v41 = vmul.f32 %v689_v36, %v473_v39 }
 0x13e   : > { %v481_v42 = vperm.slane %v475_v41, 0  ;;  %v492_v43 = vperm.slane %v475_v41, 1  ;;  %v499_v45 = vperm.slane %v475_v41, 2  ;;  %v506_v49 = vperm.slane %v475_v41, 3 }
 0x13f   : > { %v513_v52 = vperm.slane %v475_v41, 4 }
 0x140   : > { %v482_v44 = vmul.f32 %v481_v42, %v479_v40  ;;  %v493_v47 = vmul.f32 %v492_v43, %v490_v38  ;;  %v500_v53 = vmul.f32 %v499_v45, %v497_v46  ;;  %v507_v55 = vmul.f32 %v506_v49, %v504_v50 }
 0x141   : > { %v514_v57 = vmul.f32 %v513_v52, %v511_v54 }
 0x142   : > { %v487_v48 = vadd.f32 %v485_v35, %v482_v44 }
 0x144   : > { %v494_v51 = vadd.f32 %v493_v47, %v487_v48 }
 0x146   : > { %v501_v56 = vadd.f32 %v500_v53, %v494_v51 }
 0x148   : > { %v508_v58 = vadd.f32 %v507_v55, %v501_v56 }
 0x14a   : > { %v515_v59 = vadd.f32 %v514_v57, %v508_v58 }
 0x14c   : > { %517 = vst.msk [vmem:[%s168_s19] sm:$0x7] %vm516_vm2, %v515_v59 }
 0x14d PF: > { %s13_s12 = sadd.s32 1, %s696_s12  }
 0x14e   : > { %p10_p4 = scmp.ge.s32.totalorder %s13_s12, 4  }
 0x150   :  { %12 = sbr.rel (!%p10_p4) target bundleno = 1 (0x1), region = 62 }

</bundles_post_ra>
